<compile_context>
chip_gen: v7x
topology: tpu7x:2x2x1
jax: 0.10.0
libtpu: 0.0.40
codegen_flags: <defaults>
</compile_context>

<pallas_src>
import jax
import jax.numpy as jnp
from jax.experimental import pallas as pl
from jax.experimental.pallas import tpu as pltpu
import numpy as np


# --------------------------------------------------------------------------- #
# Kernel
# --------------------------------------------------------------------------- #
def _decoder_kernel(x_ref, w1_ref, b1_ref, w2_ref, b2_ref,
                    w3_ref, b3_ref, w4_ref, b4_ref, o_ref):
    """Fused 4-layer MLP, transposed layout: activations are (features, TB).

    Weights are (out, in); biases are (out, 1) and broadcast along lanes.
    Batch occupies the lane axis -> lane-dense VPU ops and unmasked stores.
    """
    def dense(w_ref, b_ref, h):
        return jnp.dot(w_ref[...], h,
                       preferred_element_type=jnp.float32,
                       precision=jax.lax.Precision.HIGHEST) + b_ref[...]

    h = x_ref[...]                                   # (latent, TB)
    h = jnp.maximum(dense(w1_ref, b1_ref, h), 0.0)   # (8,  TB)
    h = jnp.maximum(dense(w2_ref, b2_ref, h), 0.0)   # (16, TB)
    h = jnp.maximum(dense(w3_ref, b3_ref, h), 0.0)   # (32, TB)
    o_ref[...] = jnp.tanh(dense(w4_ref, b4_ref, h))  # tanh on EUP (own slot)


# --------------------------------------------------------------------------- #
# Reference / small-batch fast path
# --------------------------------------------------------------------------- #
def reference_forward(x, params):
    """Plain-JAX reference (also the small-batch fast path)."""
    h = x
    for i, (w, b) in enumerate(params):
        h = jnp.dot(h, w, precision=jax.lax.Precision.HIGHEST) + b
        h = jnp.maximum(h, 0.0) if i < len(params) - 1 else jnp.tanh(h)
    return h


# --------------------------------------------------------------------------- #
# Tile / VMEM sizing per TPU generation
# --------------------------------------------------------------------------- #
def _round_up(x, m):
    return -(-x // m) * m


def _chip_tile_defaults():
    """Return (max_batch_tile, vmem_limit_bytes) sized per TPU generation."""
    tile_b = 32768                       # safe everywhere (~2.7 MB HBM / step)
    vmem_limit = 32 * 1024 * 1024        # fits v7x's 64 MiB physical VMEM
    try:
        info = pltpu.get_tpu_info()
        vmem_cap = int(getattr(info, "vmem_capacity_bytes", 0) or 0)
        if vmem_cap >= 100 * 1024 * 1024:
            # v5e / v6e: 128 MiB physical VMEM -> bigger tiles, raised limit.
            tile_b = 65536
            vmem_limit = 64 * 1024 * 1024
        elif vmem_cap > 0:
            # v7x: 64 MiB physical VMEM, 3.2 TB/s HBM -> large but capped tiles.
            tile_b = 49152
            vmem_limit = 32 * 1024 * 1024
    except Exception:                     # trace-time query unavailable: keep defaults
        pass
    return tile_b, vmem_limit


# --------------------------------------------------------------------------- #
# Wrapper
# --------------------------------------------------------------------------- #
def _old_decoder_forward_impl(x, params, *, tile_b=None, force_pallas=False):
    """x: (B, latent) float32.  params: list of (W (in,out), b (1,out)).

    Pallas path: batch on the lane axis, tiled with TB (multiple of 128 for
    B >= 128).  No explicit padding: Pallas clips the partial final block.
    """
    (w1, b1), (w2, b2), (w3, b3), (w4, b4) = params
    B, latent = x.shape
    out_features = w4.shape[1]

    # Tiny batches: pallas_call launch/step overhead dominates -> let XLA fuse.
    if not force_pallas and B < 128:
        return reference_forward(x, params)

    max_tb, vmem_limit = _chip_tile_defaults()
    if tile_b is not None:
        max_tb = int(tile_b)

    # Tile size along the batch (lane) axis.
    if B <= max_tb:
        tb = _round_up(B, 128) if B >= 128 else B    # single tile, lane-dense
    else:
        tb = max_tb
        # Keep >= 4 grid steps (dual-TC sharding + DMA pipelining) when it does
        # not shrink tiles below ~8192.
        if pl.cdiv(B, tb) < 4 and B >= 4 * 8192:
            tb = max(8192, _round_up(pl.cdiv(B, 4), 128))
    grid = (pl.cdiv(B, tb),)

    # Lane-dense operand layout (transposes fuse / constant-fold under jit).
    xt = jnp.transpose(x)                                        # (latent, B)
    wts = [jnp.transpose(w) for w in (w1, w2, w3, w4)]           # (out, in)
    bts = [jnp.transpose(b) for b in (b1, b2, b3, b4)]           # (out, 1)

    def act_spec(feat):                                          # tiled along batch
        return pl.BlockSpec((feat, tb), lambda i: (0, i))

    def const_spec(a):                                           # VMEM-resident
        return pl.BlockSpec(a.shape, lambda i: (0, 0))

    operands = (xt, wts[0], bts[0], wts[1], bts[1],
                wts[2], bts[2], wts[3], bts[3])
    in_specs = [act_spec(latent)] + [const_spec(a) for a in operands[1:]]

    # Advisory cost for XLA scheduling around the custom call.
    dims = [latent] + [w.shape[0] for w in wts]                  # [5, 8, 16, 32, out]
    flops = 2 * B * sum(dims[i] * dims[i + 1] for i in range(len(dims) - 1))
    param_bytes = 4 * sum(int(np.prod(w.shape)) + int(np.prod(b.shape))
                          for w, b in zip(wts, bts))
    cost = pl.CostEstimate(
        flops=int(flops),
        transcendentals=int(out_features * B),
        bytes_accessed=int(4 * B * (latent + out_features) + param_bytes),
    )

    out_t = pl.pallas_call(
        _decoder_kernel,
        out_shape=jax.ShapeDtypeStruct((out_features, B), jnp.float32),
        grid=grid,
        in_specs=in_specs,
        out_specs=act_spec(out_features),
        compiler_params=pltpu.CompilerParams(
            dimension_semantics=("parallel",),        # 2x on v7x dual TC
            vmem_limit_bytes=vmem_limit),
        cost_estimate=cost,
    )(*operands)

    return jnp.transpose(out_t)                                  # (B, out)


# jit so boundary transposes fuse and weight transposes constant-fold.
old_decoder_forward = jax.jit(_old_decoder_forward_impl,
                              static_argnames=("tile_b", "force_pallas"))


# --------------------------------------------------------------------------- #
# Parameter init (PyTorch Linear default: U[-1/sqrt(fan_in), +1/sqrt(fan_in)])
# --------------------------------------------------------------------------- #
def init_params(key, latent_features=5, layers_factor=8, out_features=16):
    coder_layers = [4 * layers_factor, 2 * layers_factor, 1 * layers_factor]
    coder_layers.reverse()                 # -> [8, 16, 32]
    dims = [latent_features] + coder_layers + [out_features]
    params = []
    for i in range(len(dims) - 1):
        fan_in, fan_out = dims[i], dims[i + 1]
        key, kw, kb = jax.random.split(key, 3)
        bound = 1.0 / np.sqrt(fan_in)
        w = jax.random.uniform(kw, (fan_in, fan_out), jnp.float32, -bound, bound)
        b = jax.random.uniform(kb, (1, fan_out), jnp.float32, -bound, bound)
        params.append((w, b))
    return params


if __name__ == "__main__":
    key = jax.random.PRNGKey(0)
    latent_features, out_features = 5, 16
    k1, k2, k3, kp = jax.random.split(key, 4)

    params = init_params(kp, latent_features=latent_features,
                         layers_factor=8, out_features=out_features)

    # 1) Small shape consistent with the module; force the Pallas path.
    x_small = jax.random.normal(k1, (8, latent_features), dtype=jnp.float32)
    out_small = jax.block_until_ready(
        old_decoder_forward(x_small, params, force_pallas=True))
    np.testing.assert_allclose(np.asarray(out_small),
                               np.asarray(reference_forward(x_small, params)),
                               rtol=1e-5, atol=1e-5)

    # 2) Moderate batch, default per-generation tiling (single lane-dense tile).
    x_mid = jax.random.normal(k2, (512, latent_features), dtype=jnp.float32)
    out_mid = jax.block_until_ready(old_decoder_forward(x_mid, params))
    np.testing.assert_allclose(np.asarray(out_mid),
                               np.asarray(reference_forward(x_mid, params)),
                               rtol=1e-5, atol=1e-5)

    # 3) Multi-step grid with a partial (clipped) final block: B=500, tb=256.
    x_partial = jax.random.normal(k3, (500, latent_features), dtype=jnp.float32)
    out_partial = jax.block_until_ready(
        old_decoder_forward(x_partial, params, tile_b=256))
    np.testing.assert_allclose(np.asarray(out_partial),
                               np.asarray(reference_forward(x_partial, params)),
                               rtol=1e-5, atol=1e-5)

    print("KERNEL_OK")
</pallas_src>

<mosaic_0001>
module attributes {stable_mosaic.version = 11 : i64} {
  func.func @_decoder_kernel(%arg0: i32, %arg1: memref<5x8xf32, #tpu.memory_space<vmem>>, %arg2: memref<8x5xf32, #tpu.memory_space<vmem>>, %arg3: memref<8x1xf32, #tpu.memory_space<vmem>>, %arg4: memref<16x8xf32, #tpu.memory_space<vmem>>, %arg5: memref<16x1xf32, #tpu.memory_space<vmem>>, %arg6: memref<32x16xf32, #tpu.memory_space<vmem>>, %arg7: memref<32x1xf32, #tpu.memory_space<vmem>>, %arg8: memref<16x32xf32, #tpu.memory_space<vmem>>, %arg9: memref<16x1xf32, #tpu.memory_space<vmem>>, %arg10: memref<16x8xf32, #tpu.memory_space<vmem>>) attributes {dimension_semantics = [#tpu.dimension_semantics<parallel>], iteration_bounds = array<i64: 1>, scalar_prefetch = 0 : i64, scratch_operands = 0 : i64, tpu.core_type = #tpu.core_type<tc>, window_params = [{transform_indices = @transform_0, window_bounds = array<i64: 5, 8>}, {pipeline_mode = #tpu.pipeline_mode<synchronous>, transform_indices = @transform_1, window_bounds = array<i64: 8, 5>}, {pipeline_mode = #tpu.pipeline_mode<synchronous>, transform_indices = @transform_2, window_bounds = array<i64: 8, 1>}, {pipeline_mode = #tpu.pipeline_mode<synchronous>, transform_indices = @transform_3, window_bounds = array<i64: 16, 8>}, {pipeline_mode = #tpu.pipeline_mode<synchronous>, transform_indices = @transform_4, window_bounds = array<i64: 16, 1>}, {pipeline_mode = #tpu.pipeline_mode<synchronous>, transform_indices = @transform_5, window_bounds = array<i64: 32, 16>}, {pipeline_mode = #tpu.pipeline_mode<synchronous>, transform_indices = @transform_6, window_bounds = array<i64: 32, 1>}, {pipeline_mode = #tpu.pipeline_mode<synchronous>, transform_indices = @transform_7, window_bounds = array<i64: 16, 32>}, {pipeline_mode = #tpu.pipeline_mode<synchronous>, transform_indices = @transform_8, window_bounds = array<i64: 16, 1>}, {transform_indices = @transform_9, window_bounds = array<i64: 16, 8>}]} {
    %c0 = arith.constant 0 : index
    %c0_0 = arith.constant 0 : index
    %0 = vector.load %arg1[%c0, %c0_0] : memref<5x8xf32, #tpu.memory_space<vmem>>, vector<5x8xf32>
    %c0_1 = arith.constant 0 : index
    %c0_2 = arith.constant 0 : index
    %1 = vector.load %arg2[%c0_1, %c0_2] : memref<8x5xf32, #tpu.memory_space<vmem>>, vector<8x5xf32>
    %cst = arith.constant dense<0.000000e+00> : vector<8x8xf32>
    %2 = tpu.matmul %1, %0, %cst {dimension_numbers = #tpu.dot_dimension_numbers<[1], [0], [0], [1], [0, 0, 1, 1], [], []>, precision = #tpu.contract_precision<fp32>} : vector<8x5xf32>, vector<5x8xf32>, vector<8x8xf32> -> vector<8x8xf32>
    %c0_3 = arith.constant 0 : index
    %c0_4 = arith.constant 0 : index
    %3 = vector.load %arg3[%c0_3, %c0_4] : memref<8x1xf32, #tpu.memory_space<vmem>>, vector<8x1xf32>
    %4 = vector.broadcast %3 : vector<8x1xf32> to vector<8x8xf32>
    %5 = arith.addf %2, %4 : vector<8x8xf32>
    %cst_5 = arith.constant 0.000000e+00 : f32
    %6 = vector.broadcast %cst_5 : f32 to vector<8x8xf32>
    %7 = arith.maximumf %5, %6 : vector<8x8xf32>
    %c0_6 = arith.constant 0 : index
    %c0_7 = arith.constant 0 : index
    %8 = vector.load %arg4[%c0_6, %c0_7] : memref<16x8xf32, #tpu.memory_space<vmem>>, vector<16x8xf32>
    %cst_8 = arith.constant dense<0.000000e+00> : vector<16x8xf32>
    %9 = tpu.matmul %8, %7, %cst_8 {dimension_numbers = #tpu.dot_dimension_numbers<[1], [0], [0], [1], [0, 0, 1, 1], [], []>, precision = #tpu.contract_precision<fp32>} : vector<16x8xf32>, vector<8x8xf32>, vector<16x8xf32> -> vector<16x8xf32>
    %c0_9 = arith.constant 0 : index
    %c0_10 = arith.constant 0 : index
    %10 = vector.load %arg5[%c0_9, %c0_10] : memref<16x1xf32, #tpu.memory_space<vmem>>, vector<16x1xf32>
    %11 = vector.broadcast %10 : vector<16x1xf32> to vector<16x8xf32>
    %12 = arith.addf %9, %11 : vector<16x8xf32>
    %cst_11 = arith.constant 0.000000e+00 : f32
    %13 = vector.broadcast %cst_11 : f32 to vector<16x8xf32>
    %14 = arith.maximumf %12, %13 : vector<16x8xf32>
    %c0_12 = arith.constant 0 : index
    %c0_13 = arith.constant 0 : index
    %15 = vector.load %arg6[%c0_12, %c0_13] : memref<32x16xf32, #tpu.memory_space<vmem>>, vector<32x16xf32>
    %cst_14 = arith.constant dense<0.000000e+00> : vector<32x8xf32>
    %16 = tpu.matmul %15, %14, %cst_14 {dimension_numbers = #tpu.dot_dimension_numbers<[1], [0], [0], [1], [0, 0, 1, 1], [], []>, precision = #tpu.contract_precision<fp32>} : vector<32x16xf32>, vector<16x8xf32>, vector<32x8xf32> -> vector<32x8xf32>
    %c0_15 = arith.constant 0 : index
    %c0_16 = arith.constant 0 : index
    %17 = vector.load %arg7[%c0_15, %c0_16] : memref<32x1xf32, #tpu.memory_space<vmem>>, vector<32x1xf32>
    %18 = vector.broadcast %17 : vector<32x1xf32> to vector<32x8xf32>
    %19 = arith.addf %16, %18 : vector<32x8xf32>
    %cst_17 = arith.constant 0.000000e+00 : f32
    %20 = vector.broadcast %cst_17 : f32 to vector<32x8xf32>
    %21 = arith.maximumf %19, %20 : vector<32x8xf32>
    %c0_18 = arith.constant 0 : index
    %c0_19 = arith.constant 0 : index
    %22 = vector.load %arg8[%c0_18, %c0_19] : memref<16x32xf32, #tpu.memory_space<vmem>>, vector<16x32xf32>
    %cst_20 = arith.constant dense<0.000000e+00> : vector<16x8xf32>
    %23 = tpu.matmul %22, %21, %cst_20 {dimension_numbers = #tpu.dot_dimension_numbers<[1], [0], [0], [1], [0, 0, 1, 1], [], []>, precision = #tpu.contract_precision<fp32>} : vector<16x32xf32>, vector<32x8xf32>, vector<16x8xf32> -> vector<16x8xf32>
    %c0_21 = arith.constant 0 : index
    %c0_22 = arith.constant 0 : index
    %24 = vector.load %arg9[%c0_21, %c0_22] : memref<16x1xf32, #tpu.memory_space<vmem>>, vector<16x1xf32>
    %25 = vector.broadcast %24 : vector<16x1xf32> to vector<16x8xf32>
    %26 = arith.addf %23, %25 : vector<16x8xf32>
    %27 = math.tanh %26 : vector<16x8xf32>
    %c0_23 = arith.constant 0 : index
    %c0_24 = arith.constant 0 : index
    %28 = vector.load %arg10[%c0_23, %c0_24] : memref<16x8xf32, #tpu.memory_space<vmem>>, vector<16x8xf32>
    tpu.vector_store %arg10[%c0_23, %c0_24], %27 {strides = array<i32>} : memref<16x8xf32, #tpu.memory_space<vmem>>, vector<16x8xf32>,
    return
  }
  func.func @transform_0(%arg0: i32) -> (i32, i32) {
    %c0_i32 = arith.constant 0 : i32
    %c0_i32_0 = arith.constant 0 : i32
    return %c0_i32, %arg0 : i32, i32
  }
  func.func @transform_1(%arg0: i32) -> (i32, i32) {
    %c0_i32 = arith.constant 0 : i32
    %c0_i32_0 = arith.constant 0 : i32
    %c0_i32_1 = arith.constant 0 : i32
    return %c0_i32, %c0_i32_0 : i32, i32
  }
  func.func @transform_2(%arg0: i32) -> (i32, i32) {
    %c0_i32 = arith.constant 0 : i32
    %c0_i32_0 = arith.constant 0 : i32
    %c0_i32_1 = arith.constant 0 : i32
    return %c0_i32, %c0_i32_0 : i32, i32
  }
  func.func @transform_3(%arg0: i32) -> (i32, i32) {
    %c0_i32 = arith.constant 0 : i32
    %c0_i32_0 = arith.constant 0 : i32
    %c0_i32_1 = arith.constant 0 : i32
    return %c0_i32, %c0_i32_0 : i32, i32
  }
  func.func @transform_4(%arg0: i32) -> (i32, i32) {
    %c0_i32 = arith.constant 0 : i32
    %c0_i32_0 = arith.constant 0 : i32
    %c0_i32_1 = arith.constant 0 : i32
    return %c0_i32, %c0_i32_0 : i32, i32
  }
  func.func @transform_5(%arg0: i32) -> (i32, i32) {
    %c0_i32 = arith.constant 0 : i32
    %c0_i32_0 = arith.constant 0 : i32
    %c0_i32_1 = arith.constant 0 : i32
    return %c0_i32, %c0_i32_0 : i32, i32
  }
  func.func @transform_6(%arg0: i32) -> (i32, i32) {
    %c0_i32 = arith.constant 0 : i32
    %c0_i32_0 = arith.constant 0 : i32
    %c0_i32_1 = arith.constant 0 : i32
    return %c0_i32, %c0_i32_0 : i32, i32
  }
  func.func @transform_7(%arg0: i32) -> (i32, i32) {
    %c0_i32 = arith.constant 0 : i32
    %c0_i32_0 = arith.constant 0 : i32
    %c0_i32_1 = arith.constant 0 : i32
    return %c0_i32, %c0_i32_0 : i32, i32
  }
  func.func @transform_8(%arg0: i32) -> (i32, i32) {
    %c0_i32 = arith.constant 0 : i32
    %c0_i32_0 = arith.constant 0 : i32
    %c0_i32_1 = arith.constant 0 : i32
    return %c0_i32, %c0_i32_0 : i32, i32
  }
  func.func @transform_9(%arg0: i32) -> (i32, i32) {
    %c0_i32 = arith.constant 0 : i32
    %c0_i32_0 = arith.constant 0 : i32
    return %c0_i32, %arg0 : i32, i32
  }
}

</mosaic_0001>

<bundles_post_ra>
// kernel: _old_decoder_forward_impl.1
= control target key start
LH: loop header
LB: loop body
LE: loop exit
PB: predicated region body
PF: predicated region fallthrough
CT: control target
= control target key end

     0   :  { %vm44_vm0 = vcmask 1044480   ;;  %vm40_vm1 = vcmask 39936   ;;  %v2625_v0 = vmov 0.0   ;;  %vm2626_vm2 = vmmov 0   ;;  %s2806_s0 = inlined_call_operand.vmem [shape: f32[5,8], index: 0, kind: input, shape index: {}]   ;;  %s2807_s1 = inlined_call_operand.vmem [shape: f32[8,5], index: 1, kind: input, shape index: {}]   ;;  %s2808_s2 = inlined_call_operand.vmem [shape: f32[8,1], index: 2, kind: input, shape index: {}]   ;;  %s2809_s4 = inlined_call_operand.vmem [shape: f32[16,1], index: 4, kind: input, shape index: {}]   ;;  %s2810_s6 = inlined_call_operand.vmem [shape: f32[32,1], index: 6, kind: input, shape index: {}]   ;;  %s2811_s8 = inlined_call_operand.vmem [shape: f32[16,1], index: 8, kind: input, shape index: {}]   ;;  %s2812_s3 = inlined_call_operand.vmem [shape: f32[16,8], index: 3, kind: input, shape index: {}]   ;;  %s2813_s5 = inlined_call_operand.vmem [shape: f32[32,16], index: 5, kind: input, shape index: {}]   ;;  %s2814_s7 = inlined_call_operand.vmem [shape: f32[16,32], index: 7, kind: input, shape index: {}]   ;;  %s2815_s9 = inlined_call_operand.vmem [shape: f32[16,8], index: 9, kind: output, shape index: {}]  }
   0x1   :  { %2299 = vmatprep.subr.mxu0 %v2625_v0  ;;  %v32_v1 = vld [vmem:[%s2806_s0] sm:$0x1f]  ;;  %2301 = vmatprep.mubr.msk.f32.mxu0 %vm2626_vm2, %v2625_v0  ;;  %v2627_v6 = vmov 0   ;;  %v1012_v14 = vld [vmem:[%s2810_s6 + $0x8] sm:$0xff]  ;;  %v1014_v19 = vld [vmem:[%s2810_s6 + $0x18] sm:$0xff]  ;;  %vm509_vm3 = vcmask 64512  }
   0x2   :  { %v33_v2 = vld [vmem:[%s2807_s1] sm:$0xff]  ;;  %v46_v4 = vsel %vm44_vm0, %v32_v1, 0  ;;  %2619 = vset.pattern.permute.xlu0 %v2627_v6  ;;  %2620 = vset.pattern.permute.xlu1 %v2627_v6  ;;  %v1643_v20 = vld [vmem:[%s2811_s8 + $0x8] sm:$0xff]  ;;  %v1013_v30 = vld [vmem:[%s2810_s6 + $0x10] sm:$0xff]  ;;  %vm1035_vm4 = vcmask 130048   ;;  %vm1654_vm5 = vcmask 261120  }
   0x3   :  { %v34_v3 = vld [vmem:[%s2808_s2] sm:$0xff]  ;;  %v42_v5 = vsel %vm40_vm1, %v33_v2, 0  ;;  %v49_v7 = vand.u32 4294901760, %v46_v4  ;;  %v498_v28 = vld [vmem:[%s2809_s4 + $0x8] sm:$0xff]  ;;  %v1009_v55 = vld [vmem:[%s2813_s5 + $0x10] sm:$0xff] }
   0x4   :  { %v114_v8 = vand.u32 4294901760, %v42_v5  ;;  %37 = vperm.xlu0 %2619, %v34_v3   ;;  %v497_v9 = vld [vmem:[%s2809_s4] sm:$0xff]  ;;  %506 = vperm.xlu1 %2620, %v498_v28   ;;  %v496_v32 = vld [vmem:[%s2812_s3 + $0x8] sm:$0xff]  ;;  %v1043_v56 = vsel %vm1035_vm4, %v1009_v55, 0  ;;  %v1010_v57 = vld [vmem:[%s2813_s5 + $0x18] sm:$0xff] }
   0x5   :  { %2300 = vmatpush3.msra.mxu0 %v49_v7  ;;  %v126_v10 = vsub.f32 %v46_v4, %v49_v7  ;;  %v495_v21 = vld [vmem:[%s2812_s3] sm:$0xff]  ;;  %v514_v33 = vsel %vm509_vm3, %v496_v32, 0  ;;  %v1008_v51 = vld [vmem:[%s2813_s5 + $0x8] sm:$0xff]  ;;  %v1046_v59 = vsel %vm1035_vm4, %v1010_v57, 0  ;;  %v2746_v63 = vand.u32 4294901760, %v1043_v56 }
   0x6   :  { %v115_v11 = vsub.f32 %v42_v5, %v114_v8  ;;  %2304 = vmatprep.subr.mxu0 %v2625_v0  ;;  %v511_v22 = vsel %vm509_vm3, %v495_v21, 0  ;;  %v1011_v29 = vld [vmem:[%s2810_s6] sm:$0xff]  ;;  %v592_v34 = vand.u32 4294901760, %v514_v33  ;;  %v1040_v53 = vsel %vm1035_vm4, %v1008_v51, 0 }
   0x7   :  { %v127_v13 = vand.u32 4294901760, %v126_v10  ;;  %v582_v23 = vand.u32 4294901760, %v511_v22  ;;  %v1642_v31 = vld [vmem:[%s2811_s8] sm:$0xff]  ;;  %v2744_v62 = vand.u32 4294901760, %v1040_v53  ;;  %v2749_v1 = vand.u32 4294901760, %v1046_v59 }
   0x8   :  { %v116_v12 = vand.u32 4294901760, %v115_v11  ;;  %501 = vperm.xlu0 %2619, %v497_v9   ;;  %1017 = vperm.xlu1 %2620, %v1011_v29   ;;  %v593_v35 = vsub.f32 %v514_v33, %v592_v34  ;;  %v1007_v49 = vld [vmem:[%s2813_s5] sm:$0xff]  ;;  %v1136_v2 = vsub.f32 %v1043_v56, %v2746_v63 }
   0x9   :  { %v128_v16 = vsub.f32 %v126_v10, %v127_v13  ;;  %v583_v24 = vsub.f32 %v511_v22, %v582_v23  ;;  %v1037_v50 = vsel %vm1035_vm4, %v1007_v49, 0 }
   0xa   :  { %v117_v15 = vsub.f32 %v115_v11, %v116_v12  ;;  %v594_v36 = vand.u32 4294901760, %v593_v35  ;;  %v2731_v52 = vand.u32 4294901760, %v1037_v50 }
   0xb   :  { %v129_v18 = vand.u32 4294901760, %v128_v16  ;;  %v584_v25 = vand.u32 4294901760, %v583_v24 }
   0xc   :  { %v118_v17 = vand.u32 4294901760, %v117_v15  ;;  %1022 = vperm.xlu0 %2619, %v1012_v14   ;;  %1027 = vperm.xlu1 %2620, %v1013_v30   ;;  %v595_v41 = vsub.f32 %v593_v35, %v594_v36  ;;  %v2734_v54 = vsub.f32 %v1037_v50, %v2731_v52 }
   0xd   :  { %v585_v26 = vsub.f32 %v583_v24, %v584_v25 }
   0xe   :  { %2302 = vmatmul.mubr.f32.vlgmr.msra.gmra.mrb[0].mxu0 %v118_v17  ;;  %v596_v44 = vand.u32 4294901760, %v595_v41  ;;  %v1117_v58 = vand.u32 4294901760, %v2734_v54 }
   0xf   :  { %2305 = vmatpush3.msra.mxu0 %v129_v18  ;;  %2306 = vmatprep.mubr.msk.f32.mxu0 %vm2626_vm2, %v2625_v0  ;;  %v586_v27 = vand.u32 4294901760, %v585_v26 }
  0x10   :  { %2309 = vmatprep.subr.mxu0 %v2625_v0  ;;  %1032 = vperm.xlu0 %2619, %v1014_v19   ;;  %v1118_v60 = vsub.f32 %v2734_v54, %v1117_v58 }
  0x11   :  { %2331 = vmatprep.mubr.f32.mxu1 %v586_v27  ;;  %1646 = vperm.xlu1 %2620, %v1642_v31  }
  0x12   :  { %v1119_v61 = vand.u32 4294901760, %v1118_v60 }
  0x14   :  { %1651 = vperm.xlu0 %2619, %v1643_v20  }
  0x16   :  { %2307 = vmatmul.mubr.f32.vlgmr.msra.gmra.mrb[0].mxu0 %v114_v8 }
  0x17   :  { %2310 = vmatpush3.msra.mxu0 %v126_v10  ;;  %2311 = vmatprep.mubr.msk.f32.mxu0 %vm2626_vm2, %v2625_v0  ;;  %v1146_v10 = vsub.f32 %v1046_v59, %v2749_v1 }
  0x18   :  { %2314 = vmatprep.subr.mxu0 %v2625_v0 }
  0x19   :  { %v1147_v17 = vand.u32 4294901760, %v1146_v10 }
  0x1e   :  { %2312 = vmatmul.mubr.f32.vlgmr.msra.gmra.mrb[0].mxu0 %v115_v11 }
  0x1f   :  { %2315 = vmatpush3.msra.mxu0 %v49_v7  ;;  %2316 = vmatprep.mubr.msk.f32.mxu0 %vm2626_vm2, %v2625_v0 }
  0x20   :  { %2319 = vmatprep.subr.mxu0 %v2625_v0 }
  0x26   :  { %2317 = vmatmul.mubr.f32.vlgmr.msra.gmra.mrb[0].mxu0 %v116_v12  ;;  %v1137_v12 = vand.u32 4294901760, %v1136_v2 }
  0x27   :  { %2320 = vmatpush3.msra.mxu0 %v127_v13  ;;  %2321 = vmatprep.mubr.msk.f32.mxu0 %vm2626_vm2, %v2625_v0 }
  0x28   :  { %2324 = vmatprep.subr.mxu0 %v2625_v0  ;;  %v1138_v19 = vsub.f32 %v1136_v2, %v1137_v12 }
  0x2a   :  { %v1139_v27 = vand.u32 4294901760, %v1138_v19 }
  0x2e   :  { %2322 = vmatmul.mubr.f32.vlgmr.msra.gmra.mrb[0].mxu0 %v114_v8 }
  0x2f   :  { %2325 = vmatpush3.msra.mxu0 %v49_v7  ;;  %2326 = vmatprep.mubr.msk.f32.mxu0 %vm2626_vm2, %v2625_v0  ;;  %v1126_v0 = vsub.f32 %v1040_v53, %v2744_v62 }
  0x31   :  { %v1127_v9 = vand.u32 4294901760, %v1126_v0 }
  0x33   :  { %v1128_v16 = vsub.f32 %v1126_v0, %v1127_v9 }
  0x36   :  { %2327 = vmatmul.mubr.f32.vlgmr.msra.gmra.mrb[0].mxu0 %v114_v8 }
  0x37   :  { %2363 = vmatprep.mubr.f32.mxu0 %v1119_v61 }
  0x83   :  { %v38_v37 = vpop.permute.xlu0 %37  ;;  %v507_v3 = vpop.permute.xlu1 %506 }
  0x87   :  { %v502_v5 = vpop.permute.xlu0 %501 }
 0x109   :  { %v490_v38 = vpop.f32.mrb[0].mxu0 }
 0x10a   :  { %v2557_v39 = vadd.f32 %v490_v38, %v38_v37  ;;  %v2328_v40 = vpop.f32.mrb[1].mxu0 }
 0x10c   :  { %v494_v42 = vmax.f32 %v2557_v39, 0.0 }
 0x10e   :  { %v517_v43 = vand.u32 4294901760, %v494_v42 }
 0x110   :  { %v604_v45 = vsub.f32 %v494_v42, %v517_v43  ;;  %2329 = vmatprep.subr.mxu1 %v517_v43 }
 0x111   :  { %2330 = vmatpush3.msra.mxu1 %v517_v43 }
 0x112   :  { %2332 = vmatmul.mubr.f32.vlgmr.msra.gmra.mrb[0].mxu1 %v596_v44  ;;  %v605_v46 = vand.u32 4294901760, %v604_v45  ;;  %v1023_v44 = vpop.permute.xlu0 %1022 }
 0x113   :  { %2336 = vmatprep.mubr.f32.mxu1 %v582_v23 }
 0x114   :  { %v606_v47 = vsub.f32 %v604_v45, %v605_v46 }
 0x116   :  { %v607_v48 = vand.u32 4294901760, %v606_v47  ;;  %v1033_v53 = vpop.permute.xlu0 %1032 }
 0x118   :  { %2334 = vmatprep.subr.mxu1 %v607_v48 }
 0x119   :  { %2335 = vmatpush3.msra.mxu1 %v607_v48 }
 0x11a   :  { %2337 = vmatmul.mubr.f32.vlgmr.msra.gmra.mrb[0].mxu1 %v592_v34  ;;  %2339 = vmatprep.subr.mxu1 %v604_v45 }
 0x11b   :  { %2340 = vmatpush3.msra.mxu1 %v604_v45  ;;  %2341 = vmatprep.mubr.f32.mxu1 %v583_v24  ;;  %v1129_v24 = vand.u32 4294901760, %v1128_v16 }
 0x11c   :  { %2344 = vmatprep.subr.mxu1 %v517_v43 }
 0x122   :  { %2342 = vmatmul.mubr.f32.vlgmr.msra.gmra.mrb[0].mxu1 %v593_v35  ;;  %v1640_v35 = vld [vmem:[%s2814_s7] sm:$0xff] }
 0x123   :  { %2345 = vmatpush3.msra.mxu1 %v517_v43  ;;  %2346 = vmatprep.mubr.f32.mxu1 %v584_v25  ;;  %v1148_v25 = vsub.f32 %v1146_v10, %v1147_v17  ;;  %v1656_v37 = vsel %vm1654_vm5, %v1640_v35, 0 }
 0x124   :  { %2349 = vmatprep.subr.mxu1 %v605_v46  ;;  %v2772_v39 = vand.u32 4294901760, %v1656_v37 }
 0x125   :  { %v1149_v32 = vand.u32 4294901760, %v1148_v25 }
 0x126   :  { %v2775_v40 = vsub.f32 %v1656_v37, %v2772_v39 }
 0x128   :  { %v1732_v41 = vand.u32 4294901760, %v2775_v40 }
 0x12a   :  { %2347 = vmatmul.mubr.f32.vlgmr.msra.gmra.mrb[0].mxu1 %v594_v36  ;;  %v1641_v36 = vld [vmem:[%s2814_s7 + $0x8] sm:$0xff]  ;;  %v1733_v42 = vsub.f32 %v2775_v40, %v1732_v41 }
 0x12b   :  { %2350 = vmatpush3.msra.mxu1 %v605_v46  ;;  %2351 = vmatprep.mubr.f32.mxu1 %v582_v23  ;;  %v1659_v38 = vsel %vm1654_vm5, %v1641_v36, 0  ;;  %v1018_v46 = vpop.permute.xlu1 %1017 }
 0x12c   :  { %2354 = vmatprep.subr.mxu1 %v517_v43  ;;  %v2781_v45 = vand.u32 4294901760, %v1659_v38 }
 0x12e   :  { %v2784_v51 = vsub.f32 %v1659_v38, %v2781_v45 }
 0x12f   :  { %v1028_v56 = vpop.permute.xlu1 %1027 }
 0x132   :  { %2352 = vmatmul.mubr.f32.vlgmr.msra.gmra.mrb[0].mxu1 %v592_v34 }
 0x133   :  { %2355 = vmatpush3.msra.mxu1 %v517_v43  ;;  %2356 = vmatprep.mubr.f32.mxu1 %v582_v23  ;;  %v1734_v43 = vand.u32 4294901760, %v1733_v42 }
 0x13a   :  { %2357 = vmatmul.mubr.f32.vlgmr.msra.gmra.mrb[0].mxu1 %v592_v34 }
 0x13b   :  { %2427 = vmatprep.mubr.f32.mxu1 %v1734_v43 }
 0x20d   :  { %v2358_v4 = vpop.f32.mrb[0].mxu1 }
 0x20e   :  { %v2558_v6 = vadd.f32 %v2358_v4, %v507_v3  ;;  %v995_v7 = vpop.f32.mrb[1].mxu1 }
 0x20f   :  { %v2559_v8 = vadd.f32 %v995_v7, %v502_v5 }
 0x210   :  { %v1006_v11 = vmax.f32 %v2558_v6, 0.0 }
 0x211   :  { %v1005_v13 = vmax.f32 %v2559_v8, 0.0 }
 0x212   :  { %v1052_v14 = vand.u32 4294901760, %v1006_v11 }
 0x213   :  { %v1049_v15 = vand.u32 4294901760, %v1005_v13 }
 0x214   :  { %v1164_v18 = vsub.f32 %v1006_v11, %v1052_v14 }
 0x215   :  { %v2485_v20 = vpack.c.bf16 %v1052_v14, %v1049_v15  ;;  %v1157_v21 = vsub.f32 %v1005_v13, %v1049_v15 }
 0x216   :  { %v1165_v22 = vand.u32 4294901760, %v1164_v18 }
 0x217   :  { %v1158_v23 = vand.u32 4294901760, %v1157_v21  ;;  %2486 = vmatprep.subr.bf16.mxu0 %v2485_v20  ;;  %v2493_v26 = vpack.c.bf16 %v1164_v18, %v1157_v21 }
 0x218   :  { %2488 = vmatpush3.bf16.msra.mxu0 %v2485_v20  ;;  %v1166_v28 = vsub.f32 %v1164_v18, %v1165_v22 }
 0x219   :  { %v1159_v29 = vsub.f32 %v1157_v21, %v1158_v23  ;;  %v2501_v30 = vpack.c.bf16 %v1165_v22, %v1158_v23 }
 0x21a   :  { %v1167_v31 = vand.u32 4294901760, %v1166_v28 }
 0x21b   :  { %2364 = vmatmul.mubr.f32.vlgmr.msra.gmra.mrb[2].mxu0 %v1129_v24  ;;  %v1160_v33 = vand.u32 4294901760, %v1159_v29  ;;  %v1652_v29 = vpop.permute.xlu0 %1651 }
 0x21c   :  { %2366 = vmatprep.mubr.f32.mxu0 %v1139_v27 }
 0x21d   :  { %v2489_v34 = vpack.c.bf16 %v1167_v31, %v1160_v33  ;;  %v1647_v31 = vpop.permute.xlu1 %1646 }
 0x21f   :  { %2367 = vmatmul.mubr.f32.gmra.mrb[4].mxu0 %v1149_v32  ;;  %2490 = vmatprep.subr.bf16.mxu0 %v2489_v34 }
 0x220   :  { %2492 = vmatpush3.bf16.msra.mxu0 %v2489_v34  ;;  %2373 = vmatprep.mubr.f32.mxu0 %v2731_v52 }
 0x221   :  { %2494 = vmatprep.subr.bf16.mxu0 %v2493_v26 }
 0x223   :  { %2374 = vmatmul.mubr.f32.vlgmr.msra.gmra.mrb[2].mxu0 %v2744_v62 }
 0x224   :  { %2496 = vmatpush3.bf16.msra.mxu0 %v2493_v26  ;;  %2376 = vmatprep.mubr.f32.mxu0 %v2746_v63 }
 0x225   :  { %2498 = vmatprep.subr.bf16.mxu0 %v2485_v20 }
 0x227   :  { %2377 = vmatmul.mubr.f32.gmra.mrb[4].mxu0 %v2749_v1 }
 0x228   :  { %2383 = vmatprep.mubr.f32.mxu0 %v2734_v54 }
 0x22b   :  { %2384 = vmatmul.mubr.f32.vlgmr.msra.gmra.mrb[2].mxu0 %v1126_v0 }
 0x22c   :  { %2500 = vmatpush3.bf16.msra.mxu0 %v2485_v20  ;;  %2386 = vmatprep.mubr.f32.mxu0 %v1136_v2 }
 0x22d   :  { %2502 = vmatprep.subr.bf16.mxu0 %v2501_v30 }
 0x22f   :  { %2387 = vmatmul.mubr.f32.gmra.mrb[4].mxu0 %v1146_v10 }
 0x230   :  { %2393 = vmatprep.mubr.f32.mxu0 %v1117_v58 }
 0x233   :  { %2394 = vmatmul.mubr.f32.vlgmr.msra.gmra.mrb[2].mxu0 %v1127_v9 }
 0x234   :  { %2504 = vmatpush3.bf16.msra.mxu0 %v2501_v30  ;;  %2396 = vmatprep.mubr.f32.mxu0 %v1137_v12 }
 0x235   :  { %2506 = vmatprep.subr.bf16.mxu0 %v2485_v20 }
 0x237   :  { %2397 = vmatmul.mubr.f32.gmra.mrb[4].mxu0 %v1147_v17 }
 0x238   :  { %2403 = vmatprep.mubr.f32.mxu0 %v2731_v52 }
 0x23b   :  { %2404 = vmatmul.mubr.f32.vlgmr.msra.gmra.mrb[2].mxu0 %v2744_v62 }
 0x23c   :  { %2508 = vmatpush3.bf16.msra.mxu0 %v2485_v20  ;;  %2406 = vmatprep.mubr.f32.mxu0 %v2746_v63 }
 0x23f   :  { %2407 = vmatmul.mubr.f32.gmra.mrb[4].mxu0 %v2749_v1 }
 0x240   :  { %2413 = vmatprep.mubr.f32.mxu0 %v2731_v52 }
 0x243   :  { %2414 = vmatmul.mubr.f32.vlgmr.msra.gmra.mrb[2].mxu0 %v2744_v62  ;;  %v1742_v62 = vand.u32 4294901760, %v2784_v51 }
 0x244   :  { %2416 = vmatprep.mubr.f32.mxu0 %v2746_v63 }
 0x245   :  { %v1743_v8 = vsub.f32 %v2784_v51, %v1742_v62 }
 0x247   :  { %2417 = vmatmul.mubr.f32.gmra.mrb[4].mxu0 %v2749_v1  ;;  %v1744_v19 = vand.u32 4294901760, %v1743_v8 }
 0x316   :  { %v2415_v47 = vpop.f32.mrb[2].mxu0 }
 0x317   :  { %v2560_v48 = vadd.f32 %v2415_v47, %v1023_v44  ;;  %v1614_v49 = vpop.f32.mrb[3].mxu0 }
 0x318   :  { %v2561_v50 = vadd.f32 %v1614_v49, %v1018_v46 }
 0x319   :  { %v1637_v52 = vmax.f32 %v2560_v48, 0.0 }
 0x31a   :  { %v1636_v54 = vmax.f32 %v2561_v50, 0.0  ;;  %v2418_v55 = vpop.f32.mrb[4].mxu0 }
 0x31b   :  { %v1665_v57 = vand.u32 4294901760, %v1637_v52  ;;  %v2562_v58 = vadd.f32 %v2418_v55, %v1033_v53  ;;  %v1626_v59 = vpop.f32.mrb[5].mxu0 }
 0x31c   :  { %v1662_v60 = vand.u32 4294901760, %v1636_v54  ;;  %v2563_v61 = vadd.f32 %v1626_v59, %v1028_v56 }
 0x31d   :  { %v1759_v63 = vsub.f32 %v1637_v52, %v1665_v57  ;;  %v1639_v0 = vmax.f32 %v2562_v58, 0.0 }
 0x31e   :  { %v2509_v1 = vpack.c.bf16 %v1665_v57, %v1662_v60  ;;  %v1752_v2 = vsub.f32 %v1636_v54, %v1662_v60  ;;  %v1638_v3 = vmax.f32 %v2563_v61, 0.0 }
 0x31f   :  { %v1760_v4 = vand.u32 4294901760, %v1759_v63  ;;  %v1671_v5 = vand.u32 4294901760, %v1639_v0 }
 0x320   :  { %v1753_v6 = vand.u32 4294901760, %v1752_v2  ;;  %v1668_v7 = vand.u32 4294901760, %v1638_v3  ;;  %2510 = vmatprep.subr.bf16.mxu1 %v2509_v1  ;;  %v2525_v9 = vpack.c.bf16 %v1759_v63, %v1752_v2 }
 0x321   :  { %v1773_v10 = vsub.f32 %v1639_v0, %v1671_v5  ;;  %2512 = vmatpush3.bf16.msra.mxu1 %v2509_v1  ;;  %v1761_v11 = vsub.f32 %v1759_v63, %v1760_v4 }
 0x322   :  { %v2513_v12 = vpack.c.bf16 %v1671_v5, %v1668_v7  ;;  %v1766_v13 = vsub.f32 %v1638_v3, %v1668_v7  ;;  %v1754_v14 = vsub.f32 %v1752_v2, %v1753_v6  ;;  %v2541_v15 = vpack.c.bf16 %v1760_v4, %v1753_v6 }
 0x323   :  { %v1774_v16 = vand.u32 4294901760, %v1773_v10  ;;  %v1762_v17 = vand.u32 4294901760, %v1761_v11 }
 0x324   :  { %v1767_v18 = vand.u32 4294901760, %v1766_v13  ;;  %2514 = vmatprep.subr.bf16.mxu1 %v2513_v12  ;;  %v1755_v20 = vand.u32 4294901760, %v1754_v14  ;;  %v2529_v21 = vpack.c.bf16 %v1773_v10, %v1766_v13 }
 0x325   :  { %2516 = vmatpush3.bf16.msra.mxu1 %v2513_v12  ;;  %v1775_v22 = vsub.f32 %v1773_v10, %v1774_v16 }
 0x326   :  { %v2517_v23 = vpack.c.bf16 %v1762_v17, %v1755_v20  ;;  %v1768_v24 = vsub.f32 %v1766_v13, %v1767_v18  ;;  %v2545_v25 = vpack.c.bf16 %v1774_v16, %v1767_v18 }
 0x327   :  { %v1776_v26 = vand.u32 4294901760, %v1775_v22 }
 0x328   :  { %2428 = vmatmul.mubr.f32.vlgmr.msra.gmra.mrb[2].mxu1 %v1744_v19  ;;  %2518 = vmatprep.subr.bf16.mxu1 %v2517_v23  ;;  %v1769_v27 = vand.u32 4294901760, %v1768_v24 }
 0x329   :  { %2520 = vmatpush3.bf16.msra.mxu1 %v2517_v23  ;;  %2438 = vmatprep.mubr.f32.mxu1 %v2772_v39 }
 0x32a   :  { %v2521_v28 = vpack.c.bf16 %v1776_v26, %v1769_v27 }
 0x32c   :  { %2522 = vmatprep.subr.bf16.mxu1 %v2521_v28 }
 0x32d   :  { %2524 = vmatpush3.bf16.msra.mxu1 %v2521_v28 }
 0x32e   :  { %2526 = vmatprep.subr.bf16.mxu1 %v2525_v9 }
 0x330   :  { %2439 = vmatmul.mubr.f32.vlgmr.msra.gmra.mrb[2].mxu1 %v2781_v45 }
 0x331   :  { %2528 = vmatpush3.bf16.msra.mxu1 %v2525_v9  ;;  %2449 = vmatprep.mubr.f32.mxu1 %v2775_v40 }
 0x332   :  { %2530 = vmatprep.subr.bf16.mxu1 %v2529_v21 }
 0x335   :  { %2532 = vmatpush3.bf16.msra.mxu1 %v2529_v21 }
 0x336   :  { %2534 = vmatprep.subr.bf16.mxu1 %v2509_v1 }
 0x338   :  { %2450 = vmatmul.mubr.f32.vlgmr.msra.gmra.mrb[2].mxu1 %v2784_v51 }
 0x339   :  { %2536 = vmatpush3.bf16.msra.mxu1 %v2509_v1  ;;  %2460 = vmatprep.mubr.f32.mxu1 %v1732_v41 }
 0x33a   :  { %2538 = vmatprep.subr.bf16.mxu1 %v2513_v12 }
 0x33d   :  { %2540 = vmatpush3.bf16.msra.mxu1 %v2513_v12 }
 0x33e   :  { %2542 = vmatprep.subr.bf16.mxu1 %v2541_v15 }
 0x340   :  { %2461 = vmatmul.mubr.f32.vlgmr.msra.gmra.mrb[2].mxu1 %v1742_v62 }
 0x341   :  { %2544 = vmatpush3.bf16.msra.mxu1 %v2541_v15  ;;  %2471 = vmatprep.mubr.f32.mxu1 %v2772_v39 }
 0x342   :  { %2546 = vmatprep.subr.bf16.mxu1 %v2545_v25 }
 0x345   :  { %2548 = vmatpush3.bf16.msra.mxu1 %v2545_v25 }
 0x346   :  { %2550 = vmatprep.subr.bf16.mxu1 %v2509_v1 }
 0x348   :  { %2472 = vmatmul.mubr.f32.vlgmr.msra.gmra.mrb[2].mxu1 %v2781_v45 }
 0x349   :  { %2552 = vmatpush3.bf16.msra.mxu1 %v2509_v1  ;;  %2482 = vmatprep.mubr.f32.mxu1 %v2772_v39 }
 0x34a   :  { %2554 = vmatprep.subr.bf16.mxu1 %v2513_v12 }
 0x34d   :  { %2556 = vmatpush3.bf16.msra.mxu1 %v2513_v12 }
 0x350   :  { %2483 = vmatmul.mubr.f32.vlgmr.msra.gmra.mrb[2].mxu1 %v2781_v45 }
 0x423   :  { %v2484_v30 = vpop.f32.mrb[2].mxu1 }
 0x424   :  { %v2564_v32 = vadd.f32 %v2484_v30, %v1652_v29  ;;  %v2179_v33 = vpop.f32.mrb[3].mxu1 }
 0x425   :  { %v2565_v34 = vadd.f32 %v2179_v33, %v1647_v31 }
 0x426   :  { %2621 = vtanh.f32 %v2564_v32 }
 0x427   :  { %2623 = vtanh.f32 %v2565_v34 }
 0x430   :  { %v2622_v35 = vpop.eup %2621 }
 0x431   :  { %v2624_v36 = vpop.eup %2623  ;;  %2192 = vst.msk [vmem:[%s2815_s9 + $0x8] sm:$0xff] %vm509_vm3, %v2622_v35 }
 0x432   :  { %2191 = vst.msk [vmem:[%s2815_s9] sm:$0xff] %vm509_vm3, %v2624_v36 }

</bundles_post_ra>
